<compile_context>
chip_gen: v6e
topology: v6e:2x2x1
jax: 0.10.0
libtpu: 0.0.40
codegen_flags: <defaults>
</compile_context>

<pallas_src>
import functools

import jax
import jax.numpy as jnp
from jax.experimental import pallas as pl
from jax.experimental.pallas import tpu as pltpu


_LANE = 128
_SUBLANE = 8


def _round_up(x, m):
    return ((x + m - 1) // m) * m


def _cdiv(a, b):
    return -(-a // b)


# ----------------------------------------------------------------------------
# Pallas kernel: fused 3-layer (block-diagonal) 1x1-conv MLP + streaming
# max-over-group (running-max accumulator across the trailing grid axis).
# ----------------------------------------------------------------------------
def _fused_pointnet_kernel(x_ref, w1_ref, b1_ref, w2_ref, b2_ref, w3_ref,
                           b3_ref, o_ref, acc_ref):
    # x_ref : (tile_m, gc, C_in_total)  channels last (lane dim), bf16
    # o_ref : (C_out, tile_m)           centroids on the lane axis, bf16
    # acc_ref: (tile_m, C_out)          f32 running max over group chunks
    gt = pl.program_id(2)
    tile_m, gc, c_in = x_ref.shape

    @pl.when(gt == 0)
    def _():
        acc_ref[...] = jnp.full(acc_ref.shape, -jnp.inf, dtype=acc_ref.dtype)

    # (tile_m, gc, C) -> (tile_m*gc, C): gc is a multiple of 8 (or the full
    # padded group), so this collapse is relayout-free.
    x = x_ref[...].reshape(tile_m * gc, c_in)
    w2 = w2_ref[...]
    w3 = w3_ref[...]

    h = jnp.dot(x, w1_ref[...], preferred_element_type=jnp.float32)
    h = jnp.maximum(h + b1_ref[...], 0.0)
    h = jnp.dot(h.astype(w2.dtype), w2, preferred_element_type=jnp.float32)
    h = jnp.maximum(h + b2_ref[...], 0.0)
    h = jnp.dot(h.astype(w3.dtype), w3, preferred_element_type=jnp.float32)
    h = h + b3_ref[...]                                        # (rows, Cout)

    c_out = h.shape[-1]
    # max over this group chunk (torch.max(point_features, dim=2)[0]).
    pooled = jnp.max(h.reshape(tile_m, gc, c_out), axis=1)     # (tile_m, Cout)
    acc_ref[...] = jnp.maximum(acc_ref[...], pooled)

    @pl.when(gt == pl.num_programs(2) - 1)
    def _():
        # Store pre-transposed so centroids land on the lane axis: lane-dense
        # stores, no wrapper-side XLA transpose.
        o_ref[...] = acc_ref[...].T.astype(o_ref.dtype)        # (Cout, tile_m)


# ----------------------------------------------------------------------------
# VMEM-budgeted tile planning (per-generation)
# ----------------------------------------------------------------------------
def _tpu_vmem_bytes():
    """Physical VMEM per TensorCore; conservative fallback if undetectable."""
    try:
        cap = int(getattr(pltpu.get_tpu_info(), "vmem_capacity_bytes", 0))
        if cap > 0:
            return cap
    except Exception:
        pass
    kind = ""
    try:
        kind = jax.devices()[0].device_kind.lower()
    except Exception:
        pass
    if any(t in kind for t in ("v4", "v5", "v6")):
        return 128 * 1024 * 1024
    return 64 * 1024 * 1024        # v7x / unknown: be conservative


def _vmem_footprint_bytes(tile_m, gc, c_in, c_hidden, c_out, in_item, out_item):
    """Per-grid-step VMEM footprint: double-buffered input/output blocks
    (lane/sublane padded) + f32 intermediates + accumulator + resident
    (double-buffered) weights."""
    lane = lambda c: _round_up(c, _LANE)
    sub = lambda c: _round_up(c, _SUBLANE)
    rows = tile_m * gc
    inp = 2 * rows * lane(c_in) * in_item
    inter = rows * (2 * lane(c_hidden) + lane(c_out)) * 4
    acc = sub(tile_m) * lane(c_out) * 4
    outb = 2 * sub(c_out) * _round_up(tile_m, _LANE) * out_item
    wts = 2 * (sub(c_in) * lane(c_hidden)
               + sub(c_hidden) * lane(c_hidden)
               + sub(c_hidden) * lane(c_out)) * in_item
    return inp + inter + acc + outb + wts


def _plan_tiles(b, m, g, c_in, c_hidden, c_out, in_item, out_item):
    """Pick (tile_m, group_chunk, padded_group, vmem_limit_bytes)."""
    cap = _tpu_vmem_bytes()
    budget = cap // 3
    tm_min = m if m < 128 else 128

    # --- group chunk: prefer a single (un-padded) chunk when small, else a
    # sublane-aligned chunk that fits the budget at the minimal centroid tile.
    g8 = _round_up(g, _SUBLANE)
    cands = ([g8] if g8 <= 512 else []) + [c for c in (256, 128, 64, 32, 16, 8)
                                           if c < g8]
    gc = 8
    for c in cands:
        if _vmem_footprint_bytes(tm_min, c, c_in, c_hidden, c_out,
                                 in_item, out_item) <= budget:
            gc = c
            break
    gp = _round_up(g, gc)

    # --- centroid tile: largest lane-aligned tile that fits the budget while
    # keeping >= 2 parallel grid steps (v7x megacore has 2 TensorCores).
    if m <= 128:
        tile_m = m
    else:
        tile_m = 128
        for tm in (2048, 1024, 512, 256, 128):
            if tm > m:
                continue
            if _vmem_footprint_bytes(tm, gc, c_in, c_hidden, c_out,
                                     in_item, out_item) > budget:
                continue
            if tm > 128 and b * _cdiv(m, tm) < 2:
                continue
            tile_m = tm
            break

    fp = _vmem_footprint_bytes(tile_m, gc, c_in, c_hidden, c_out,
                               in_item, out_item)
    vmem_limit = int(min(cap - (12 << 20),
                         max(32 << 20, int(fp * 1.5) + (4 << 20))))
    vmem_limit = max(vmem_limit, 16 << 20)
    return tile_m, gc, gp, vmem_limit


# ----------------------------------------------------------------------------
# Pallas wrapper
# ----------------------------------------------------------------------------
def fused_pointnet_pallas(x, w1, b1, w2, b2, w3, b3, *, tile_m, group_chunk,
                          out_dtype=jnp.bfloat16, vmem_limit_bytes=None):
    """x: (B, M, Gp, C_in_total) -> (B, C_out, M)  (bf16 in, bf16 out)."""
    B, M, Gp, c_in = x.shape
    c_out = w3.shape[1]
    grid = (B, _cdiv(M, tile_m), Gp // group_chunk)

    return pl.pallas_call(
        _fused_pointnet_kernel,
        out_shape=jax.ShapeDtypeStruct((B, c_out, M), out_dtype),
        grid_spec=pltpu.PrefetchScalarGridSpec(
            num_scalar_prefetch=0,
            grid=grid,
            in_specs=[
                pl.BlockSpec((None, tile_m, group_chunk, c_in),
                             lambda b, mt, gt: (b, mt, gt, 0)),
                pl.BlockSpec(w1.shape, lambda b, mt, gt: (0, 0)),
                pl.BlockSpec(b1.shape, lambda b, mt, gt: (0, 0)),
                pl.BlockSpec(w2.shape, lambda b, mt, gt: (0, 0)),
                pl.BlockSpec(b2.shape, lambda b, mt, gt: (0, 0)),
                pl.BlockSpec(w3.shape, lambda b, mt, gt: (0, 0)),
                pl.BlockSpec(b3.shape, lambda b, mt, gt: (0, 0)),
            ],
            out_specs=pl.BlockSpec((None, c_out, tile_m),
                                   lambda b, mt, gt: (b, 0, mt)),
            scratch_shapes=[pltpu.VMEM((tile_m, c_out), jnp.float32)],
        ),
        compiler_params=pltpu.CompilerParams(
            dimension_semantics=("parallel", "parallel", "arbitrary"),
            vmem_limit_bytes=vmem_limit_bytes),
    )(x, w1, b1, w2, b2, w3, b3)


# ----------------------------------------------------------------------------
# Plain-JAX glue: FPS sampling + ball-query grouping
# ----------------------------------------------------------------------------
def farthest_point_sample(pts, m):
    """pts: (N, 3) -> (m,) int32 indices. Deterministic start at index 0."""
    n = pts.shape[0]

    def body(i, carry):
        sel, d2, last = carry
        dist = jnp.sum((pts - pts[last][None, :]) ** 2, axis=-1)
        d2 = jnp.minimum(d2, dist)
        nxt = jnp.argmax(d2).astype(jnp.int32)
        return sel.at[i].set(nxt), d2, nxt

    sel0 = jnp.zeros((m,), jnp.int32)
    d2_0 = jnp.full((n,), jnp.inf, dtype=jnp.float32)
    sel, _, _ = jax.lax.fori_loop(1, m, body, (sel0, d2_0, jnp.int32(0)))
    return sel


def _block_diag(a, b):
    za = jnp.zeros((a.shape[0], b.shape[1]), a.dtype)
    zb = jnp.zeros((b.shape[0], a.shape[1]), b.dtype)
    return jnp.concatenate(
        [jnp.concatenate([a, za], axis=1),
         jnp.concatenate([zb, b], axis=1)], axis=0)


def mrg_set_abstraction_forward(points, point_features, params, *,
                                ball_query_radius, max_group_size,
                                compute_dtype=jnp.bfloat16):
    """points: [B, 3, N], point_features: [B, Cin, N].

    Returns centroids [B, 3, N//4] (f32) and centroid_features
    [B, Cout, N//4] (bf16, f32-accumulated).
    """
    B, _, N = points.shape
    Cin = point_features.shape[1]
    M = N // 4
    G = min(max_group_size, N)

    # Fuse the two point-nets into one MLP with block-diagonal weights so a
    # single pallas_call emits the already-concatenated output.  Channel order
    # [features | points] matches cat([feature_..., point_...], dim=1).
    fp = params["feature_point_net"]
    pp = params["point_point_net"]
    w1 = _block_diag(fp[0], pp[0]).astype(compute_dtype)
    w2 = _block_diag(fp[2], pp[2]).astype(compute_dtype)
    w3 = _block_diag(fp[4], pp[4]).astype(compute_dtype)
    b1 = jnp.concatenate([fp[1], pp[1]], axis=-1)                 # f32 biases
    b2 = jnp.concatenate([fp[3], pp[3]], axis=-1)
    b3 = jnp.concatenate([fp[5], pp[5]], axis=-1)

    c_total = Cin + 3
    c_hidden = w1.shape[1]
    Cout = w3.shape[1]
    itemsize = jnp.dtype(compute_dtype).itemsize
    tile_m, gc, Gp, vmem_limit = _plan_tiles(
        B, M, G, c_total, c_hidden, Cout, itemsize, itemsize)

    # permute(0,2,1).reshape(-1, C)
    pts_flat = jnp.transpose(points, (0, 2, 1)).reshape(-1, 3)
    pts_r = pts_flat.reshape(B, N, 3)
    feats_r = jnp.transpose(point_features, (0, 2, 1))            # [B, N, Cin]

    # sample: FPS, ratio 1/4 per batch
    sel = jax.vmap(lambda p: farthest_point_sample(p, M))(pts_r)  # [B, M]
    indices = (sel + jnp.arange(B, dtype=jnp.int32)[:, None] * N).reshape(-1)
    centroids_flat = pts_flat[indices]                            # [B*M, 3]
    cents_r = centroids_flat.reshape(B, M, 3)

    # groupMRG: ball query within radius — partial top-k of the Gp smallest
    # in-radius indices instead of a full sort over N.  Padded slots replicate
    # the first in-radius point so they can never win the max.
    d2 = jnp.sum((cents_r[:, :, None, :] - pts_r[:, None, :, :]) ** 2, axis=-1)
    within = d2 <= ball_query_radius ** 2
    cand = jnp.where(within, jnp.arange(N, dtype=jnp.int32)[None, None, :], N)
    k = min(Gp, N)
    neg_topk, _ = jax.lax.top_k(-cand, k)
    cand_g = -neg_topk                                            # ascending
    if Gp > k:
        cand_g = jnp.concatenate(
            [cand_g, jnp.broadcast_to(cand_g[:, :, :1], (B, M, Gp - k))],
            axis=-1)
    first = cand_g[:, :, :1]          # centroid itself is always within radius
    gidx = jnp.where(cand_g == N, first, cand_g)                  # [B, M, Gp]

    # Single fused gather of the pre-concatenated bf16 [features | points]
    # table; centroid subtraction on the point channels fuses into the gather
    # (one HBM pass over the grouped tensor instead of gather+pad+cast).
    per_point = jnp.concatenate([feats_r, pts_r], axis=-1).astype(compute_dtype)
    cent_off = jnp.concatenate(
        [jnp.zeros((B, M, Cin), compute_dtype), cents_r.astype(compute_dtype)],
        axis=-1)                                                  # [B, M, Cin+3]
    bidx = jnp.arange(B)[:, None, None]
    region = per_point[bidx, gidx] - cent_off[:, :, None, :]      # [B,M,Gp,C]

    out = fused_pointnet_pallas(region, w1, b1, w2, b2, w3, b3,
                                tile_m=tile_m, group_chunk=gc,
                                out_dtype=compute_dtype,
                                vmem_limit_bytes=vmem_limit)      # (B,Cout,M)

    # matches torch `centroids.view(B, 3, -1)` on the [B*M, 3] tensor
    centroids_out = centroids_flat.reshape(B, 3, M)
    return centroids_out, out


# ----------------------------------------------------------------------------
# Deterministic parameter init (Xavier uniform weights, zero biases)
# ----------------------------------------------------------------------------
def xavier_uniform(key, fan_in, fan_out):
    bound = (6.0 / (fan_in + fan_out)) ** 0.5
    # weights stored as (in, out) so x @ W matches Conv2d(in, out, 1)
    return jax.random.uniform(key, (fan_in, fan_out), jnp.float32,
                              -bound, bound)


def init_params(key, input_channels, output_channels):
    ks = jax.random.split(key, 6)
    c, o2 = input_channels, output_channels // 2
    pp = (xavier_uniform(ks[0], 3, c), jnp.zeros((1, c), jnp.float32),
          xavier_uniform(ks[1], c, c), jnp.zeros((1, c), jnp.float32),
          xavier_uniform(ks[2], c, o2), jnp.zeros((1, o2), jnp.float32))
    fp = (xavier_uniform(ks[3], c, c), jnp.zeros((1, c), jnp.float32),
          xavier_uniform(ks[4], c, c), jnp.zeros((1, c), jnp.float32),
          xavier_uniform(ks[5], c, o2), jnp.zeros((1, o2), jnp.float32))
    return {"point_point_net": pp, "feature_point_net": fp}


if __name__ == "__main__":
    B = 2               # batch_size
    N = 32              # num_points (centroids = N // 4 = 8)
    Cin = 8             # input_channels
    Cout = 16           # output_channels
    G = 16              # max_group_size (small for the demo)
    radius = 1.0        # ball_query_radius

    key = jax.random.PRNGKey(0)
    k_pts, k_feat, k_par = jax.random.split(key, 3)
    points = jax.random.normal(k_pts, (B, 3, N), dtype=jnp.float32)
    point_features = jax.random.normal(k_feat, (B, Cin, N), dtype=jnp.float32)
    params = init_params(k_par, Cin, Cout)

    fwd = jax.jit(functools.partial(mrg_set_abstraction_forward,
                                    ball_query_radius=radius,
                                    max_group_size=G))
    centroids, centroid_features = fwd(points, point_features, params)
    jax.block_until_ready((centroids, centroid_features))

    assert centroids.shape == (B, 3, N // 4)
    assert centroid_features.shape == (B, Cout, N // 4)
    assert bool(jnp.all(jnp.isfinite(centroid_features.astype(jnp.float32))))
    print("KERNEL_OK")
</pallas_src>

<mosaic_0001>
module attributes {stable_mosaic.version = 11 : i64} {
  func.func @_fused_pointnet_kernel(%arg0: i32, %arg1: i32, %arg2: i32, %arg3: memref<1x8x16x11xbf16, #tpu.memory_space<vmem>>, %arg4: memref<11x16xbf16, #tpu.memory_space<vmem>>, %arg5: memref<1x16xf32, #tpu.memory_space<vmem>>, %arg6: memref<16x16xbf16, #tpu.memory_space<vmem>>, %arg7: memref<1x16xf32, #tpu.memory_space<vmem>>, %arg8: memref<16x16xbf16, #tpu.memory_space<vmem>>, %arg9: memref<1x16xf32, #tpu.memory_space<vmem>>, %arg10: memref<1x16x8xbf16, #tpu.memory_space<vmem>>, %arg11: memref<8x16xf32, #tpu.memory_space<vmem>>) attributes {dimension_semantics = [#tpu.dimension_semantics<parallel>, #tpu.dimension_semantics<parallel>, #tpu.dimension_semantics<arbitrary>], iteration_bounds = array<i64: 2, 1, 1>, scalar_prefetch = 0 : i64, scratch_operands = 1 : i64, tpu.core_type = #tpu.core_type<tc>, window_params = [{transform_indices = @transform_0, window_bounds = array<i64: 1, 8, 16, 11>}, {pipeline_mode = #tpu.pipeline_mode<synchronous>, transform_indices = @transform_1, window_bounds = array<i64: 11, 16>}, {pipeline_mode = #tpu.pipeline_mode<synchronous>, transform_indices = @transform_2, window_bounds = array<i64: 1, 16>}, {pipeline_mode = #tpu.pipeline_mode<synchronous>, transform_indices = @transform_3, window_bounds = array<i64: 16, 16>}, {pipeline_mode = #tpu.pipeline_mode<synchronous>, transform_indices = @transform_4, window_bounds = array<i64: 1, 16>}, {pipeline_mode = #tpu.pipeline_mode<synchronous>, transform_indices = @transform_5, window_bounds = array<i64: 16, 16>}, {pipeline_mode = #tpu.pipeline_mode<synchronous>, transform_indices = @transform_6, window_bounds = array<i64: 1, 16>}, {transform_indices = @transform_7, window_bounds = array<i64: 1, 16, 8>}]} {
    %c0_i32 = arith.constant 0 : i32
    %0 = arith.cmpi eq, %arg2, %c0_i32 : i32
    %1 = arith.extui %0 : i1 to i32
    %c0_i32_0 = arith.constant 0 : i32
    %2 = arith.cmpi ne, %1, %c0_i32_0 : i32
    scf.if %2 {
      %cst_27 = arith.constant 0xFF800000 : f32
      %35 = vector.broadcast %cst_27 : f32 to vector<8x16xf32>
      %c0_28 = arith.constant 0 : index
      %c0_29 = arith.constant 0 : index
      %36 = vector.load %arg11[%c0_28, %c0_29] : memref<8x16xf32, #tpu.memory_space<vmem>>, vector<8x16xf32>
      tpu.vector_store %arg11[%c0_28, %c0_29], %35 {strides = array<i32>} : memref<8x16xf32, #tpu.memory_space<vmem>>, vector<8x16xf32>,
    } else {
    }
    %c0 = arith.constant 0 : index
    %c0_1 = arith.constant 0 : index
    %c0_2 = arith.constant 0 : index
    %c0_3 = arith.constant 0 : index
    %3 = vector.load %arg3[%c0, %c0_1, %c0_2, %c0_3] : memref<1x8x16x11xbf16, #tpu.memory_space<vmem>>, vector<1x8x16x11xbf16>
    %4 = vector.shape_cast %3 : vector<1x8x16x11xbf16> to vector<8x16x11xbf16>
    %5 = vector.shape_cast %4 : vector<8x16x11xbf16> to vector<128x11xbf16>
    %c0_4 = arith.constant 0 : index
    %c0_5 = arith.constant 0 : index
    %6 = vector.load %arg6[%c0_4, %c0_5] : memref<16x16xbf16, #tpu.memory_space<vmem>>, vector<16x16xbf16>
    %c0_6 = arith.constant 0 : index
    %c0_7 = arith.constant 0 : index
    %7 = vector.load %arg8[%c0_6, %c0_7] : memref<16x16xbf16, #tpu.memory_space<vmem>>, vector<16x16xbf16>
    %c0_8 = arith.constant 0 : index
    %c0_9 = arith.constant 0 : index
    %8 = vector.load %arg4[%c0_8, %c0_9] : memref<11x16xbf16, #tpu.memory_space<vmem>>, vector<11x16xbf16>
    %cst = arith.constant dense<0.000000e+00> : vector<128x16xf32>
    %9 = tpu.matmul %5, %8, %cst {dimension_numbers = #tpu.dot_dimension_numbers<[1], [0], [0], [1], [0, 0, 1, 1], [], []>} : vector<128x11xbf16>, vector<11x16xbf16>, vector<128x16xf32> -> vector<128x16xf32>
    %c0_10 = arith.constant 0 : index
    %c0_11 = arith.constant 0 : index
    %10 = vector.load %arg5[%c0_10, %c0_11] : memref<1x16xf32, #tpu.memory_space<vmem>>, vector<1x16xf32>
    %11 = vector.broadcast %10 : vector<1x16xf32> to vector<128x16xf32>
    %12 = arith.addf %9, %11 : vector<128x16xf32>
    %cst_12 = arith.constant 0.000000e+00 : f32
    %13 = vector.broadcast %cst_12 : f32 to vector<128x16xf32>
    %14 = arith.maximumf %12, %13 : vector<128x16xf32>
    %15 = arith.truncf %14 : vector<128x16xf32> to vector<128x16xbf16>
    %cst_13 = arith.constant dense<0.000000e+00> : vector<128x16xf32>
    %16 = tpu.matmul %15, %6, %cst_13 {dimension_numbers = #tpu.dot_dimension_numbers<[1], [0], [0], [1], [0, 0, 1, 1], [], []>} : vector<128x16xbf16>, vector<16x16xbf16>, vector<128x16xf32> -> vector<128x16xf32>
    %c0_14 = arith.constant 0 : index
    %c0_15 = arith.constant 0 : index
    %17 = vector.load %arg7[%c0_14, %c0_15] : memref<1x16xf32, #tpu.memory_space<vmem>>, vector<1x16xf32>
    %18 = vector.broadcast %17 : vector<1x16xf32> to vector<128x16xf32>
    %19 = arith.addf %16, %18 : vector<128x16xf32>
    %cst_16 = arith.constant 0.000000e+00 : f32
    %20 = vector.broadcast %cst_16 : f32 to vector<128x16xf32>
    %21 = arith.maximumf %19, %20 : vector<128x16xf32>
    %22 = arith.truncf %21 : vector<128x16xf32> to vector<128x16xbf16>
    %cst_17 = arith.constant dense<0.000000e+00> : vector<128x16xf32>
    %23 = tpu.matmul %22, %7, %cst_17 {dimension_numbers = #tpu.dot_dimension_numbers<[1], [0], [0], [1], [0, 0, 1, 1], [], []>} : vector<128x16xbf16>, vector<16x16xbf16>, vector<128x16xf32> -> vector<128x16xf32>
    %c0_18 = arith.constant 0 : index
    %c0_19 = arith.constant 0 : index
    %24 = vector.load %arg9[%c0_18, %c0_19] : memref<1x16xf32, #tpu.memory_space<vmem>>, vector<1x16xf32>
    %25 = vector.broadcast %24 : vector<1x16xf32> to vector<128x16xf32>
    %26 = arith.addf %23, %25 : vector<128x16xf32>
    %27 = vector.shape_cast %26 : vector<128x16xf32> to vector<8x16x16xf32>
    %cst_20 = arith.constant dense<0xFF800000> : vector<8x16xf32>
    %28 = vector.multi_reduction <maximumf>, %27, %cst_20 [1] : vector<8x16x16xf32> to vector<8x16xf32>
    %c0_21 = arith.constant 0 : index
    %c0_22 = arith.constant 0 : index
    %29 = vector.load %arg11[%c0_21, %c0_22] : memref<8x16xf32, #tpu.memory_space<vmem>>, vector<8x16xf32>
    %30 = arith.maximumf %29, %28 : vector<8x16xf32>
    %c0_23 = arith.constant 0 : index
    %c0_24 = arith.constant 0 : index
    %31 = vector.load %arg11[%c0_23, %c0_24] : memref<8x16xf32, #tpu.memory_space<vmem>>, vector<8x16xf32>
    tpu.vector_store %arg11[%c0_23, %c0_24], %30 {strides = array<i32>} : memref<8x16xf32, #tpu.memory_space<vmem>>, vector<8x16xf32>,
    %c0_i32_25 = arith.constant 0 : i32
    %32 = arith.cmpi eq, %arg2, %c0_i32_25 : i32
    %33 = arith.extui %32 : i1 to i32
    %c0_i32_26 = arith.constant 0 : i32
    %34 = arith.cmpi ne, %33, %c0_i32_26 : i32
    scf.if %34 {
      %c0_27 = arith.constant 0 : index
      %c0_28 = arith.constant 0 : index
      %35 = vector.load %arg11[%c0_27, %c0_28] : memref<8x16xf32, #tpu.memory_space<vmem>>, vector<8x16xf32>
      %36 = tpu.transpose %35, [1, 0] : vector<8x16xf32> -> vector<16x8xf32>
      %37 = arith.truncf %36 : vector<16x8xf32> to vector<16x8xbf16>
      %c0_29 = arith.constant 0 : index
      %c0_30 = arith.constant 0 : index
      %c0_31 = arith.constant 0 : index
      %38 = vector.load %arg10[%c0_29, %c0_30, %c0_31] : memref<1x16x8xbf16, #tpu.memory_space<vmem>>, vector<1x16x8xbf16>
      %39 = vector.shape_cast %38 : vector<1x16x8xbf16> to vector<16x8xbf16>
      %40 = vector.shape_cast %37 : vector<16x8xbf16> to vector<1x16x8xbf16>
      tpu.vector_store %arg10[%c0_29, %c0_30, %c0_31], %40 {strides = array<i32>} : memref<1x16x8xbf16, #tpu.memory_space<vmem>>, vector<1x16x8xbf16>,
    } else {
    }
    return
  }
  func.func @transform_0(%arg0: i32, %arg1: i32, %arg2: i32) -> (i32, i32, i32, i32) {
    %c0_i32 = arith.constant 0 : i32
    %c0_i32_0 = arith.constant 0 : i32
    return %arg0, %arg1, %arg2, %c0_i32 : i32, i32, i32, i32
  }
  func.func @transform_1(%arg0: i32, %arg1: i32, %arg2: i32) -> (i32, i32) {
    %c0_i32 = arith.constant 0 : i32
    %c0_i32_0 = arith.constant 0 : i32
    %c0_i32_1 = arith.constant 0 : i32
    return %c0_i32, %c0_i32_0 : i32, i32
  }
  func.func @transform_2(%arg0: i32, %arg1: i32, %arg2: i32) -> (i32, i32) {
    %c0_i32 = arith.constant 0 : i32
    %c0_i32_0 = arith.constant 0 : i32
    %c0_i32_1 = arith.constant 0 : i32
    return %c0_i32, %c0_i32_0 : i32, i32
  }
  func.func @transform_3(%arg0: i32, %arg1: i32, %arg2: i32) -> (i32, i32) {
    %c0_i32 = arith.constant 0 : i32
    %c0_i32_0 = arith.constant 0 : i32
    %c0_i32_1 = arith.constant 0 : i32
    return %c0_i32, %c0_i32_0 : i32, i32
  }
  func.func @transform_4(%arg0: i32, %arg1: i32, %arg2: i32) -> (i32, i32) {
    %c0_i32 = arith.constant 0 : i32
    %c0_i32_0 = arith.constant 0 : i32
    %c0_i32_1 = arith.constant 0 : i32
    return %c0_i32, %c0_i32_0 : i32, i32
  }
  func.func @transform_5(%arg0: i32, %arg1: i32, %arg2: i32) -> (i32, i32) {
    %c0_i32 = arith.constant 0 : i32
    %c0_i32_0 = arith.constant 0 : i32
    %c0_i32_1 = arith.constant 0 : i32
    return %c0_i32, %c0_i32_0 : i32, i32
  }
  func.func @transform_6(%arg0: i32, %arg1: i32, %arg2: i32) -> (i32, i32) {
    %c0_i32 = arith.constant 0 : i32
    %c0_i32_0 = arith.constant 0 : i32
    %c0_i32_1 = arith.constant 0 : i32
    return %c0_i32, %c0_i32_0 : i32, i32
  }
  func.func @transform_7(%arg0: i32, %arg1: i32, %arg2: i32) -> (i32, i32, i32) {
    %c0_i32 = arith.constant 0 : i32
    %c0_i32_0 = arith.constant 0 : i32
    return %arg0, %c0_i32, %arg1 : i32, i32, i32
  }
}

</mosaic_0001>

<bundles_post_ra>
// kernel: custom-call.4
= control target key start
LH: loop header
LB: loop body
LE: loop exit
PB: predicated region body
PF: predicated region fallthrough
CT: control target
= control target key end

     0   :  { %s6_s0 = inlined_call_operand.vmem [shape: f32[2,32], index: 0, kind: output, shape index: {}]  }

// kernel: mrg_set_abstraction_forward.1
= control target key start
LH: loop header
LB: loop body
LE: loop exit
PB: predicated region body
PF: predicated region fallthrough
CT: control target
= control target key end

     0   :  { %s1347_s24 = smov 0   ;;  %s1349_s25 = smov 0   ;;  %s1462_s0 = inlined_call_operand.vmem [shape: bf16[2,8,16,11], index: 0, kind: input, shape index: {}]   ;;  %s1463_s1 = inlined_call_operand.vmem [shape: bf16[11,16], index: 1, kind: input, shape index: {}]   ;;  %s1464_s2 = inlined_call_operand.vmem [shape: f32[1,16], index: 2, kind: input, shape index: {}]   ;;  %s1465_s3 = inlined_call_operand.vmem [shape: bf16[16,16], index: 3, kind: input, shape index: {}]   ;;  %s1466_s4 = inlined_call_operand.vmem [shape: f32[1,16], index: 4, kind: input, shape index: {}]   ;;  %s1467_s5 = inlined_call_operand.vmem [shape: bf16[16,16], index: 5, kind: input, shape index: {}]   ;;  %s1468_s6 = inlined_call_operand.vmem [shape: f32[1,16], index: 6, kind: input, shape index: {}]   ;;  %s1469_s7 = inlined_call_operand.vmem [shape: bf16[2,16,8], index: 7, kind: output, shape index: {}]  }
   0x1   :  { %s1351_s26 = smov 0  }
   0x2 LB: > { %s36_s27 = sadd.s32 1, %s1299_s25  ;;  %p1109_p0 = scmp.ge.s32.totalorder %s1303_s26, 1  ;;  %s1303_s26 = sphi %s1351_s26, %s17_s26   ;;  %s1299_s25 = sphi %s1349_s25, %s1471_s25   ;;  %s1295_s24 = sphi %s1347_s24, %s1470_s24  }
   0x3   : > { %p38_p1 = scmp.ge.s32.totalorder %s36_s27, 2  ;;  %p273_p2 = scmp.lt.s32.totalorder %s1303_s26, 3 }
   0x5   : > { %s1473_s27 = smov (%p38_p1, %s36_s27), 0  ;;  %p274_p3 = pnand %p1109_p0, %p273_p2 }
   0x6   : > { %p319_p4 = scmp.lt.s32.totalorder (!%p274_p3), %s1295_s24, 1 }
   0x7   : > { %277 = sbr.rel (%p274_p3) target bundleno = 817 (0x331), region = 48 }
   0xc   : > { %v1270_v0 = vld [vmem:[%s1463_s1] sm:$0x3f]   ;;  %vm447_vm0 = vcmask 1044480   ;;  %vm448_vm1 = vcmask 1045504   ;;  %v1305_v1 = vmov 65535   ;;  %s1475_s24 = smov (!%p319_p4, %s1295_s24), 1 }
   0xd   : > { %v449_v2 = vsel %vm447_vm0, 4294967295, %v1305_v1  ;;  %v1279_v5 = vld [vmem:[%s1465_s3] sm:$0xff]   ;;  %s1156_s9 = sshll.u32 %s1475_s24, 6  ;;  %vm422_vm2 = vcmask 89088   ;;  %vm346_vm3 = vcmask 130048   ;;  %vm949_vm4 = vcmask 1041409  }
   0xe   : > { %v450_v3 = vsel %vm448_vm1, %v449_v2, 0  ;;  %s330_s12 = scalar_lea.vmem %s1462_s0, %s1156_s9  ;;  %v1280_v14 = vld [vmem:[%s1467_s5] sm:$0xff]   ;;  %vm951_vm5 = vcmask 1042434   ;;  %vm953_vm6 = vcmask 1043459   ;;  %vm955_vm7 = vcmask 1044484   ;;  %s1157_s21 = sshll.u32 %s1475_s24, 3 }
   0xf   : > { %v452_v4 = vand.u32 %v1270_v0, %v450_v3  ;;  %v1271_v6 = vld [vmem:[%s330_s12] sm:$0xff]   ;;  %v1272_v7 = vld [vmem:[%s330_s12 + $0x8] sm:$0xff]   ;;  %v1273_v8 = vld [vmem:[%s330_s12 + $0x10] sm:$0xff]   ;;  %vm957_vm8 = vcmask 1045509   ;;  %vm959_vm9 = vcmask 1046534   ;;  %vm961_vm10 = vcmask 1047559   ;;  %s340_s28 = scalar_lea.vmem %s1469_s7, %s1157_s21 }
  0x10   : > { %1189 = vmatprep.mubr.msk.bf16.mxu0 %vm422_vm2, %v1271_v6  ;;  %v1275_v9 = vld [vmem:[%s330_s12 + $0x20] sm:$0xff]   ;;  %v1276_v10 = vld [vmem:[%s330_s12 + $0x28] sm:$0xff]   ;;  %v1277_v11 = vld [vmem:[%s330_s12 + $0x30] sm:$0xff]   ;;  %vm1010_vm11 = vcmask 60416  }
  0x11   : > { %1187 = vmatprep.subr.bf16.mxu0 %v452_v4  ;;  %1241 = vmatprep.subr.bf16.mxu1 %v452_v4  ;;  %v1274_v12 = vld [vmem:[%s330_s12 + $0x18] sm:$0xff]   ;;  %v1114_v17 = vld [vmem:[%s1464_s2] ss:$0 sm:$0xff] }
  0x12   : > { %1188 = vmatpush3.bf16.msra.mxu0 %v452_v4  ;;  %1242 = vmatpush3.bf16.msra.mxu1 %v452_v4  ;;  %v1278_v13 = vld [vmem:[%s330_s12 + $0x38] sm:$0xff]  }
  0x13   : > { %1205 = vmatprep.subr.bf16.mxu1 %v1279_v5  ;;  %1197 = vmatprep.mubr.msk.bf16.mxu1 %vm422_vm2, %v1275_v9 }
  0x14   : > { %1223 = vmatprep.subr.bf16.mxu0 %v1280_v14 }
  0x15   : > { %1190 = vmatmul.mubr.msk.bf16.vlgmr.msra.gmra.mxu0 %vm422_vm2, %v1272_v7  ;;  %1198 = vmatmul.mubr.msk.bf16.vlgmr.msra.gmra.mxu1 %vm422_vm2, %v1276_v10  ;;  %v1132_v10 = vld [vmem:[%s1466_s4] ss:$0 sm:$0xff] }
  0x16   : > { %1193 = vmatprep.mubr.msk.bf16.mxu0 %vm422_vm2, %v1273_v8  ;;  %1201 = vmatprep.mubr.msk.bf16.mxu1 %vm422_vm2, %v1277_v11 }
  0x17   : > { %1206 = vmatpush3.bf16.msra.mxu1 %v1279_v5  ;;  %1224 = vmatpush3.bf16.msra.mxu0 %v1280_v14 }
  0x1d   : > { %1194 = vmatmul.mubr.msk.bf16.gmra.mxu0 %vm422_vm2, %v1274_v12  ;;  %1202 = vmatmul.mubr.msk.bf16.gmra.mxu1 %vm422_vm2, %v1278_v13 }
  0xd5   : > { %v1191_v15 = vpop.f32.mrf.mxu0  ;;  %v1199_v19 = vpop.f32.mrf.mxu1 }
  0xd6   : > { %v497_v22 = vadd.f32 %v1191_v15, %v1114_v17  ;;  %v529_v58 = vadd.f32 %v1199_v19, %v1114_v17 }
  0xd7   : > { %v488_v16 = vpop.f32.mrf.mxu0  ;;  %v520_v24 = vpop.f32.mrf.mxu1 }
  0xd8   : > { %v489_v20 = vadd.f32 %v1114_v17, %v488_v16  ;;  %v553_v31 = vmax.f32 %v497_v22, 0.0  ;;  %v521_v35 = vadd.f32 %v1114_v17, %v520_v24  ;;  %v561_v63 = vmax.f32 %v529_v58, 0.0 }
  0xd9   : > { %v1192_v18 = vpop.f32.mrf.mxu0  ;;  %v1200_v28 = vpop.f32.mrf.mxu1 }
  0xda   : > { %v500_v21 = vadd.f32 %v1192_v18, %v1114_v17  ;;  %v551_v29 = vmax.f32 %v489_v20, 0.0  ;;  %v559_v45 = vmax.f32 %v521_v35, 0.0  ;;  %v532_v60 = vadd.f32 %v1200_v28, %v1114_v17 }
  0xdb   : > { %v491_v23 = vpop.f32.mrf.mxu0  ;;  %v523_v33 = vpop.f32.mrf.mxu1 }
  0xdc   : > { %v492_v25 = vadd.f32 %v1114_v17, %v491_v23  ;;  %v554_v26 = vmax.f32 %v500_v21, 0.0  ;;  %v524_v36 = vadd.f32 %v1114_v17, %v523_v33  ;;  %v562_v0 = vmax.f32 %v532_v60, 0.0 }
  0xdd   : > { %v1195_v27 = vpop.f32.mrf.mxu0  ;;  %v1203_v39 = vpop.f32.mrf.mxu1 }
  0xde   : > { %v552_v30 = vmax.f32 %v492_v25, 0.0  ;;  %v568_v37 = vpack.c.bf16 %v554_v26, %v553_v31  ;;  %v513_v42 = vadd.f32 %v1195_v27, %v1114_v17  ;;  %v560_v47 = vmax.f32 %v524_v36, 0.0 }
  0xdf   : > { %v504_v32 = vpop.f32.mrf.mxu0  ;;  %v536_v44 = vpop.f32.mrf.mxu1  ;;  %v572_v2 = vpack.c.bf16 %v562_v0, %v561_v63  ;;  %v545_v3 = vadd.f32 %v1203_v39, %v1114_v17 }
  0xe0   : > { %v567_v34 = vpack.c.bf16 %v552_v30, %v551_v29  ;;  %v505_v40 = vadd.f32 %v1114_v17, %v504_v32  ;;  %v557_v52 = vmax.f32 %v513_v42, 0.0  ;;  %v571_v55 = vpack.c.bf16 %v560_v47, %v559_v45 }
  0xe1   : > { %v1196_v38 = vpop.f32.mrf.mxu0  ;;  %v1204_v49 = vpop.f32.mrf.mxu1  ;;  %v537_v56 = vadd.f32 %v1114_v17, %v536_v44  ;;  %v565_v5 = vmax.f32 %v545_v3, 0.0 }
  0xe2   : > { %v516_v41 = vadd.f32 %v1196_v38, %v1114_v17  ;;  %1207 = vmatprep.mubr.msk.bf16.mxu1 %vm346_vm3, %v567_v34  ;;  %v555_v50 = vmax.f32 %v505_v40, 0.0  ;;  %v548_v4 = vadd.f32 %v1204_v49, %v1114_v17 }
  0xe3   : > { %v507_v43 = vpop.f32.mrf.mxu0  ;;  %1208 = vmatmul.mubr.msk.bf16.vlgmr.msra.gmra.mxu1 %vm346_vm3, %v568_v37  ;;  %v539_v53 = vpop.f32.mrf.mxu1  ;;  %v563_v61 = vmax.f32 %v537_v56, 0.0 }
  0xe4   : > { %v508_v46 = vadd.f32 %v1114_v17, %v507_v43  ;;  %v558_v48 = vmax.f32 %v516_v41, 0.0  ;;  %v540_v57 = vadd.f32 %v1114_v17, %v539_v53  ;;  %v566_v6 = vmax.f32 %v548_v4, 0.0  ;;  %v1414_v4 = vld [vmem:[%s1468_s6] ss:$0 sm:$0xff] }
  0xe6   : > { %v556_v51 = vmax.f32 %v508_v46, 0.0  ;;  %v570_v59 = vpack.c.bf16 %v558_v48, %v557_v52  ;;  %v564_v62 = vmax.f32 %v540_v57, 0.0  ;;  %v574_v7 = vpack.c.bf16 %v566_v6, %v565_v5 }
  0xe8   : > { %v569_v54 = vpack.c.bf16 %v556_v51, %v555_v50  ;;  %v573_v1 = vpack.c.bf16 %v564_v62, %v563_v61 }
  0xea   : > { %1211 = vmatprep.mubr.msk.bf16.mxu1 %vm346_vm3, %v569_v54 }
  0xeb   : > { %1212 = vmatmul.mubr.msk.bf16.gmra.mxu1 %vm346_vm3, %v570_v59 }
  0xec   : > { %1215 = vmatprep.mubr.msk.bf16.mxu1 %vm346_vm3, %v571_v55 }
  0xf3   : > { %1216 = vmatmul.mubr.msk.bf16.gmra.mxu1 %vm346_vm3, %v572_v2 }
  0xf4   : > { %1219 = vmatprep.mubr.msk.bf16.mxu1 %vm346_vm3, %v573_v1  ;;  %v1306_v1 = vmov -inf  }
  0xf5   : > { %347 = vst.msk [vmem:[#allocation2] sm:$0xff] %vm346_vm3, %v1306_v1 }
  0xfb   : > { %1220 = vmatmul.mubr.msk.bf16.gmra.mxu1 %vm346_vm3, %v574_v7 }
 0x1a3   : > { %v1209_v8 = vpop.f32.mrf.mxu1 }
 0x1a4   : > { %v656_v14 = vadd.f32 %v1209_v8, %v1132_v10 }
 0x1a5   : > { %v647_v9 = vpop.f32.mrf.mxu1 }
 0x1a6   : > { %v648_v12 = vadd.f32 %v1132_v10, %v647_v9  ;;  %v712_v21 = vmax.f32 %v656_v14, 0.0 }
 0x1a7   : > { %v1210_v11 = vpop.f32.mrf.mxu1 }
 0x1a8   : > { %v659_v13 = vadd.f32 %v1210_v11, %v1132_v10  ;;  %v710_v19 = vmax.f32 %v648_v12, 0.0 }
 0x1a9   : > { %v650_v15 = vpop.f32.mrf.mxu1 }
 0x1aa   : > { %v651_v16 = vadd.f32 %v1132_v10, %v650_v15  ;;  %v713_v17 = vmax.f32 %v659_v13, 0.0 }
 0x1ab   : > { %v1213_v18 = vpop.f32.mrf.mxu1 }
 0x1ac   : > { %v711_v20 = vmax.f32 %v651_v16, 0.0  ;;  %v727_v24 = vpack.c.bf16 %v713_v17, %v712_v21  ;;  %v672_v28 = vadd.f32 %v1213_v18, %v1132_v10 }
 0x1ad   : > { %v663_v22 = vpop.f32.mrf.mxu1 }
 0x1ae   : > { %v726_v23 = vpack.c.bf16 %v711_v20, %v710_v19  ;;  %v664_v26 = vadd.f32 %v1132_v10, %v663_v22  ;;  %v716_v35 = vmax.f32 %v672_v28, 0.0 }
 0x1af   : > { %v1214_v25 = vpop.f32.mrf.mxu1 }
 0x1b0   : > { %v675_v27 = vadd.f32 %v1214_v25, %v1132_v10  ;;  %1225 = vmatprep.mubr.msk.bf16.mxu0 %vm346_vm3, %v726_v23  ;;  %v714_v33 = vmax.f32 %v664_v26, 0.0 }
 0x1b1   : > { %v666_v29 = vpop.f32.mrf.mxu1  ;;  %1226 = vmatmul.mubr.msk.bf16.vlgmr.msra.gmra.mxu0 %vm346_vm3, %v727_v24 }
 0x1b2   : > { %v667_v30 = vadd.f32 %v1132_v10, %v666_v29  ;;  %v717_v31 = vmax.f32 %v675_v27, 0.0 }
 0x1b3   : > { %v1217_v32 = vpop.f32.mrf.mxu1 }
 0x1b4   : > { %v715_v34 = vmax.f32 %v667_v30, 0.0  ;;  %v729_v38 = vpack.c.bf16 %v717_v31, %v716_v35  ;;  %v688_v42 = vadd.f32 %v1217_v32, %v1132_v10 }
 0x1b5   : > { %v679_v36 = vpop.f32.mrf.mxu1 }
 0x1b6   : > { %v728_v37 = vpack.c.bf16 %v715_v34, %v714_v33  ;;  %v680_v40 = vadd.f32 %v1132_v10, %v679_v36  ;;  %v720_v49 = vmax.f32 %v688_v42, 0.0 }
 0x1b7   : > { %v1218_v39 = vpop.f32.mrf.mxu1 }
 0x1b8   : > { %v691_v41 = vadd.f32 %v1218_v39, %v1132_v10  ;;  %1229 = vmatprep.mubr.msk.bf16.mxu0 %vm346_vm3, %v728_v37  ;;  %v718_v47 = vmax.f32 %v680_v40, 0.0 }
 0x1b9   : > { %v682_v43 = vpop.f32.mrf.mxu1  ;;  %1230 = vmatmul.mubr.msk.bf16.gmra.mxu0 %vm346_vm3, %v729_v38 }
 0x1ba   : > { %v683_v44 = vadd.f32 %v1132_v10, %v682_v43  ;;  %v721_v45 = vmax.f32 %v691_v41, 0.0 }
 0x1bb   : > { %v1221_v46 = vpop.f32.mrf.mxu1 }
 0x1bc   : > { %v719_v48 = vmax.f32 %v683_v44, 0.0  ;;  %v731_v52 = vpack.c.bf16 %v721_v45, %v720_v49  ;;  %v704_v56 = vadd.f32 %v1221_v46, %v1132_v10 }
 0x1bd   : > { %v695_v50 = vpop.f32.mrf.mxu1 }
 0x1be   : > { %v730_v51 = vpack.c.bf16 %v719_v48, %v718_v47  ;;  %v696_v54 = vadd.f32 %v1132_v10, %v695_v50  ;;  %v724_v62 = vmax.f32 %v704_v56, 0.0 }
 0x1bf   : > { %v1222_v53 = vpop.f32.mrf.mxu1 }
 0x1c0   : > { %v707_v55 = vadd.f32 %v1222_v53, %v1132_v10  ;;  %1233 = vmatprep.mubr.msk.bf16.mxu0 %vm346_vm3, %v730_v51  ;;  %v722_v60 = vmax.f32 %v696_v54, 0.0 }
 0x1c1   : > { %v698_v57 = vpop.f32.mrf.mxu1  ;;  %1234 = vmatmul.mubr.msk.bf16.gmra.mxu0 %vm346_vm3, %v731_v52 }
 0x1c2   : > { %v699_v58 = vadd.f32 %v1132_v10, %v698_v57  ;;  %v725_v59 = vmax.f32 %v707_v55, 0.0 }
 0x1c4   : > { %v723_v61 = vmax.f32 %v699_v58, 0.0  ;;  %v733_v0 = vpack.c.bf16 %v725_v59, %v724_v62 }
 0x1c6   : > { %v732_v63 = vpack.c.bf16 %v723_v61, %v722_v60 }
 0x1c8   : > { %1237 = vmatprep.mubr.msk.bf16.mxu0 %vm346_vm3, %v732_v63 }
 0x1c9   : > { %1238 = vmatmul.mubr.msk.bf16.gmra.mxu0 %vm346_vm3, %v733_v0 }
 0x271   : > { %v1227_v2 = vpop.f32.mrf.mxu0 }
 0x272   : > { %v814_v9 = vadd.f32 %v1227_v2, %v1414_v4 }
 0x273   : > { %v805_v3 = vpop.f32.mrf.mxu0 }
 0x274   : > { %v806_v7 = vadd.f32 %v1414_v4, %v805_v3  ;;  %v877_v16 = vsel %vm346_vm3, %v814_v9, -inf }
 0x275   : > { %v1228_v5 = vpop.f32.mrf.mxu0 }
 0x276   : > { %v817_v6 = vadd.f32 %v1228_v5, %v1414_v4  ;;  %v868_v14 = vsel %vm346_vm3, %v806_v7, -inf }
 0x277   : > { %v808_v8 = vpop.f32.mrf.mxu0 }
 0x278   : > { %v809_v10 = vadd.f32 %v1414_v4, %v808_v8  ;;  %v878_v12 = vsel %vm346_vm3, %v817_v6, -inf }
 0x279   : > { %v1231_v11 = vpop.f32.mrf.mxu0  ;;  %v879_v18 = vmax.f32 %v877_v16, %v878_v12 }
 0x27a   : > { %v869_v13 = vsel %vm346_vm3, %v809_v10, -inf  ;;  %v830_v19 = vadd.f32 %v1231_v11, %v1414_v4 }
 0x27b   : > { %v821_v15 = vpop.f32.mrf.mxu0  ;;  %v870_v17 = vmax.f32 %v868_v14, %v869_v13  ;;  %v880_v27 = vrot.slane %v879_v18, 4 }
 0x27c   : > { %v822_v21 = vadd.f32 %v1414_v4, %v821_v15  ;;  %v895_v28 = vsel %vm346_vm3, %v830_v19, -inf }
 0x27d   : > { %v1232_v20 = vpop.f32.mrf.mxu0  ;;  %v871_v24 = vrot.slane %v870_v17, 4  ;;  %v881_v37 = vmax.f32 %v879_v18, %v880_v27 }
 0x27e   : > { %v833_v22 = vadd.f32 %v1232_v20, %v1414_v4  ;;  %v886_v30 = vsel %vm346_vm3, %v822_v21, -inf }
 0x27f   : > { %v824_v23 = vpop.f32.mrf.mxu0  ;;  %v872_v35 = vmax.f32 %v870_v17, %v871_v24  ;;  %v882_v49 = vrot.slane %v881_v37, 2 }
 0x280   : > { %v896_v25 = vsel %vm346_vm3, %v833_v22, -inf  ;;  %v825_v26 = vadd.f32 %v1414_v4, %v824_v23 }
 0x281   : > { %v1235_v29 = vpop.f32.mrf.mxu0  ;;  %v897_v31 = vmax.f32 %v895_v28, %v896_v25  ;;  %v873_v45 = vrot.slane %v872_v35, 2  ;;  %v883_v61 = vmax.f32 %v881_v37, %v882_v49 }
 0x282   : > { %v887_v32 = vsel %vm346_vm3, %v825_v26, -inf  ;;  %v846_v36 = vadd.f32 %v1235_v29, %v1414_v4 }
 0x283   : > { %v888_v33 = vmax.f32 %v886_v30, %v887_v32  ;;  %v837_v34 = vpop.f32.mrf.mxu0  ;;  %v898_v40 = vrot.slane %v897_v31, 4  ;;  %v874_v59 = vmax.f32 %v872_v35, %v873_v45  ;;  %v884_v12 = vrot.slane %v883_v61, 1 }
 0x284   : > { %v838_v41 = vadd.f32 %v1414_v4, %v837_v34  ;;  %v913_v46 = vsel %vm346_vm3, %v846_v36, -inf }
 0x285   : > { %v889_v38 = vrot.slane %v888_v33, 4  ;;  %v1236_v39 = vpop.f32.mrf.mxu0  ;;  %v899_v53 = vmax.f32 %v897_v31, %v898_v40  ;;  %v875_v8 = vrot.slane %v874_v59, 1 }
 0x286   : > { %v849_v42 = vadd.f32 %v1236_v39, %v1414_v4  ;;  %v904_v54 = vsel %vm346_vm3, %v838_v41, -inf }
 0x287   : > { %v890_v43 = vmax.f32 %v888_v33, %v889_v38  ;;  %v840_v44 = vpop.f32.mrf.mxu0  ;;  %v900_v1 = vrot.slane %v899_v53, 2  ;;  %v876_v23 = vmax.f32 %v874_v59, %v875_v8 }
 0x288   : > { %v914_v47 = vsel %vm346_vm3, %v849_v42, -inf  ;;  %v841_v48 = vadd.f32 %v1414_v4, %v840_v44 }
 0x289   : > { %v891_v50 = vrot.slane %v890_v43, 2  ;;  %v915_v51 = vmax.f32 %v913_v46, %v914_v47  ;;  %v1239_v52 = vpop.f32.mrf.mxu0  ;;  %v901_v16 = vmax.f32 %v899_v53, %v900_v1  ;;  %v940_v47 = vld [vmem:[#allocation2] sm:$0xff] }
 0x28a   : > { %v905_v55 = vsel %vm346_vm3, %v841_v48, -inf  ;;  %v862_v60 = vadd.f32 %v1239_v52, %v1414_v4 }
 0x28b   : > { %v916_v56 = vrot.slane %v915_v51, 4  ;;  %v906_v57 = vmax.f32 %v904_v54, %v905_v55  ;;  %v853_v58 = vpop.f32.mrf.mxu0  ;;  %v892_v62 = vmax.f32 %v890_v43, %v891_v50  ;;  %v902_v28 = vrot.slane %v901_v16, 1 }
 0x28c   : > { %v854_v3 = vadd.f32 %v1414_v4, %v853_v58  ;;  %v931_v9 = vsel %vm346_vm3, %v862_v60, -inf }
 0x28d   : > { %v907_v63 = vrot.slane %v906_v57, 4  ;;  %v1240_v0 = vpop.f32.mrf.mxu0  ;;  %v917_v2 = vmax.f32 %v915_v51, %v916_v56  ;;  %v893_v13 = vrot.slane %v892_v62, 1  ;;  %v903_v37 = vmax.f32 %v901_v16, %v902_v28 }
 0x28e   : > { %v865_v5 = vadd.f32 %v1240_v0, %v1414_v4  ;;  %v922_v18 = vsel %vm346_vm3, %v854_v3, -inf }
 0x28f   : > { %v908_v6 = vmax.f32 %v906_v57, %v907_v63  ;;  %v856_v7 = vpop.f32.mrf.mxu0  ;;  %v918_v17 = vrot.slane %v917_v2, 2  ;;  %v894_v24 = vmax.f32 %v892_v62, %v893_v13 }
 0x290   : > { %v932_v10 = vsel %vm346_vm3, %v865_v5, -inf  ;;  %v857_v11 = vadd.f32 %v1414_v4, %v856_v7  ;;  %v885_v4 = vmax.f32 %v883_v61, %v884_v12 }
 0x291   : > { %v909_v14 = vrot.slane %v908_v6, 2  ;;  %v933_v15 = vmax.f32 %v931_v9, %v932_v10  ;;  %v919_v29 = vmax.f32 %v917_v2, %v918_v17 }
 0x292   : > { %v923_v19 = vsel %vm346_vm3, %v857_v11, -inf  ;;  %v950_v32 = vsel %vm949_vm4, %v885_v4, %v876_v23 }
 0x293   : > { %v910_v20 = vmax.f32 %v908_v6, %v909_v14  ;;  %v934_v21 = vrot.slane %v933_v15, 4  ;;  %v924_v22 = vmax.f32 %v922_v18, %v923_v19  ;;  %v952_v33 = vsel %vm951_vm5, %v894_v24, %v950_v32 }
 0x294   : > { %v920_v38 = vrot.slane %v919_v29, 1  ;;  %v954_v40 = vsel %vm953_vm6, %v903_v37, %v952_v33 }
 0x295   : > { %v911_v25 = vrot.slane %v910_v20, 1  ;;  %v935_v26 = vmax.f32 %v933_v15, %v934_v21  ;;  %v925_v27 = vrot.slane %v924_v22, 4 }
 0x296   : > { %v921_v44 = vmax.f32 %v919_v29, %v920_v38 }
 0x297   : > { %v936_v30 = vrot.slane %v935_v26, 2  ;;  %v926_v31 = vmax.f32 %v924_v22, %v925_v27  ;;  %v912_v34 = vmax.f32 %v910_v20, %v911_v25 }
 0x299   : > { %v937_v35 = vmax.f32 %v935_v26, %v936_v30  ;;  %v927_v36 = vrot.slane %v926_v31, 2  ;;  %v956_v42 = vsel %vm955_vm7, %v912_v34, %v954_v40 }
 0x29a   : > { %v958_v48 = vsel %vm957_vm8, %v921_v44, %v956_v42 }
 0x29b   : > { %v928_v39 = vmax.f32 %v926_v31, %v927_v36  ;;  %v938_v41 = vrot.slane %v937_v35, 1 }
 0x29d   : > { %v929_v43 = vrot.slane %v928_v39, 1  ;;  %v939_v46 = vmax.f32 %v937_v35, %v938_v41 }
 0x29f   : > { %v930_v45 = vmax.f32 %v928_v39, %v929_v43 }
 0x2a1   : > { %v960_v49 = vsel %vm959_vm9, %v930_v45, %v958_v48 }
 0x2a2   : > { %v962_v50 = vsel %vm961_vm10, %v939_v46, %v960_v49 }
 0x2a3   : > { %v964_v51 = vmax.f32 %v940_v47, %v962_v50 }
 0x2a5   : > { %965 = vst.msk [vmem:[#allocation2] sm:$0xff] %vm346_vm3, %v964_v51 }
 0x2ac   : > { %v969_v52 = vld [vmem:[#allocation2] sm:$0xff] }
 0x2ad   : > { %970 = vxpose.xlu0.b32.start.end [1/1] (short) (narrow) %v969_v52, 16 }
 0x329   : > { %v986_v53 = vpop.trf.xlu0 }
 0x32a   : > { %v1158_v54 = vpack.c.bf16 %v986_v53, %v986_v53 }
 0x32c   : > { %1011 = vst.msk [vmem:[%s340_s28] sm:$0xf] %vm1010_vm11, %v1158_v54 }
 0x32d   : > { %v987_v55 = vpop.trf.xlu0 }
 0x32e   : > { %v1159_v56 = vpack.c.bf16 %v987_v55, %v987_v55 }
 0x330   : > { %1012 = vst.msk [vmem:[%s340_s28 + $0x4] sm:$0xf] %vm1010_vm11, %v1159_v56 }
 0x331 PF: > { %s17_s26 = sadd.s32 1, %s1303_s26   ;;  %s1470_s24 = smov %s1299_s25 }
 0x332   : > { %p14_p5 = scmp.ge.s32.totalorder %s17_s26, 4   ;;  %s1471_s25 = smov %s1473_s27 }
 0x334   :  { %16 = sbr.rel (!%p14_p5) target bundleno = 2 (0x2), region = 86 }

</bundles_post_ra>
